<compile_context>
chip_gen: v6e
topology: v6e:2x2x1
jax: 0.10.0
libtpu: 0.0.40
codegen_flags: <defaults>
</compile_context>

<pallas_src>
import functools

import jax
import jax.numpy as jnp
from jax.experimental import pallas as pl
from jax.experimental.pallas import tpu as pltpu

_LANES = 128
_SUBLANES = 8
_DEFAULT_BLOCK_ROWS = 32768            # original-x rows per grid step (target)
_VMEM_SOFT_BUDGET = 12 * 1024 * 1024   # under every chip's default scoped VMEM
_VMEM_HARD_BUDGET = 32 * 1024 * 1024   # cap on per-step buffer footprint
_VMEM_LIMIT_BYTES = 48 * 1024 * 1024   # < 64 MiB physical per TC on v7x


def _round_up(x, m):
    return ((x + m - 1) // m) * m


def _vmem_block_bytes(rows, cols, itemsize):
    # VMEM stores (rows, cols) tiles sublane/lane padded to (8, 128).
    return _round_up(max(rows, 1), _SUBLANES) * _round_up(max(cols, 1), _LANES) * itemsize


def _pick_tile(n_rows, max_rows):
    """Rows per block: multiple of 8 (or the full dim), >= 2 blocks when possible."""
    if n_rows <= _SUBLANES:
        return n_rows                               # one tiny full-dim block
    max_rows = max(_SUBLANES, (max_rows // _SUBLANES) * _SUBLANES)
    half = _round_up(-(-n_rows // 2), _SUBLANES)    # ceil(n/2) rounded to 8
    tb = max(_SUBLANES, min(max_rows, half))        # always < n_rows here
    return tb


def _packed_kernel(x_ref, w_ref, o_ref, *, feat, pack):
    # x_ref: (TBp, 128)  -- `pack` original rows per packed row, lanes 100% full
    # w_ref: (1, 128)    -- weight tiled `pack` times, resident across steps
    # o_ref: (TBp, pack) -- o_ref[r, g] = <x[pack*r + g, :], w>
    p = x_ref[...].astype(jnp.float32) * w_ref[...].astype(jnp.float32)  # VPU
    cols = [
        jnp.sum(p[:, g * feat:(g + 1) * feat], axis=-1, keepdims=True)   # XLU lane reduce
        for g in range(pack)
    ]
    o_ref[...] = jnp.concatenate(cols, axis=-1).astype(o_ref.dtype)


def _rowsum_kernel(x_ref, w_ref, o_ref):
    # Fallback (lane-padded) path: x_ref (TB, D), w_ref (1, D), o_ref (TB, 1)
    p = x_ref[...].astype(jnp.float32) * w_ref[...].astype(jnp.float32)
    o_ref[...] = jnp.sum(p, axis=-1, keepdims=True).astype(o_ref.dtype)


def linnet_forward(x, weight, class_of_interest=None, return_feats=False,
                   block_rows=_DEFAULT_BLOCK_ROWS):
    """Pallas equivalent of LinNet.forward.

    Args:
      x:      (B, num_inputs)
      weight: (1, num_inputs) -- nn.Linear(num_inputs, 1, bias=False).weight
      return_feats: if True, return the Identity features (x itself).
      block_rows: target number of original rows per grid step.

    Returns:
      (B,) array (or x if return_feats).
    """
    del class_of_interest  # unused in the reference forward
    if return_feats:
        return x  # self.feats is nn.Identity()

    B, D = x.shape
    assert weight.shape == (1, D), weight.shape
    itemsize = x.dtype.itemsize

    pack = _LANES // D if (D < _LANES and _LANES % D == 0) else 1
    use_packed = pack > 1 and B >= pack and B % pack == 0

    if use_packed:
        n_rows, n_cols, out_cols = B // pack, _LANES, pack
        x_view = x.reshape(n_rows, n_cols)        # free: contiguous dims-merge
        w_view = jnp.tile(weight, (1, pack))      # (1, 128), negligible
        kernel = functools.partial(_packed_kernel, feat=D, pack=pack)
        max_rows_req = max(1, block_rows // pack)
    else:
        # TODO(synk): B not divisible by 128//D falls back to the lane-padded
        # layout to avoid an extra HBM copy from slicing/padding x.
        n_rows, n_cols, out_cols = B, D, 1
        x_view, w_view = x, weight
        kernel = _rowsum_kernel
        max_rows_req = block_rows

    # VMEM-aware tile cap: lane-padded input tile (double buffered + ~1 tile of
    # elementwise intermediate) + lane-padded output tile (double buffered).
    per_row = (3 * _round_up(n_cols, _LANES) + 2 * _round_up(out_cols, _LANES)) * itemsize
    max_rows_budget = max(_SUBLANES, _VMEM_HARD_BUDGET // per_row)
    tb = _pick_tile(n_rows, min(max_rows_req, max_rows_budget))
    grid = pl.cdiv(n_rows, tb)

    est = (3 * _vmem_block_bytes(tb, n_cols, itemsize)
           + 2 * _vmem_block_bytes(tb, out_cols, itemsize)
           + _vmem_block_bytes(1, n_cols, itemsize)
           + (1 << 20))
    compiler_kwargs = dict(dimension_semantics=("parallel",))
    if est > _VMEM_SOFT_BUDGET:
        compiler_kwargs["vmem_limit_bytes"] = _VMEM_LIMIT_BYTES

    out2d = pl.pallas_call(
        kernel,
        out_shape=jax.ShapeDtypeStruct((n_rows, out_cols), x.dtype),
        grid=(grid,),
        in_specs=[
            pl.BlockSpec((tb, n_cols), lambda i: (i, 0)),  # streaming x tile
            pl.BlockSpec((1, n_cols), lambda i: (0, 0)),   # resident weight
        ],
        out_specs=pl.BlockSpec((tb, out_cols), lambda i: (i, 0)),
        compiler_params=pltpu.CompilerParams(**compiler_kwargs),
        cost_estimate=pl.CostEstimate(
            flops=2 * B * D,
            transcendentals=0,
            bytes_accessed=(B * D + D + B) * itemsize,
        ),
    )(x_view, w_view)

    # Row-major flatten restores original row order; this is the reference's
    # out.squeeze(-1).
    return out2d.reshape(-1)


if __name__ == "__main__":
    key = jax.random.PRNGKey(0)
    k_x, k_w = jax.random.split(key)

    B = 8            # batch
    num_inputs = 32  # feature dim (D)

    x = jax.random.normal(k_x, (B, num_inputs), dtype=jnp.float32)
    # Deterministic init mimicking nn.Linear default (uniform in +-1/sqrt(D)).
    bound = 1.0 / jnp.sqrt(jnp.float32(num_inputs))
    weight = jax.random.uniform(
        k_w, (1, num_inputs), dtype=jnp.float32, minval=-bound, maxval=bound
    )

    fwd = jax.jit(linnet_forward)
    out = jax.block_until_ready(fwd(x, weight))
    ref = jnp.squeeze(x @ weight.T, axis=-1)
    assert out.shape == (B,), out.shape
    assert jnp.allclose(out, ref, atol=1e-5, rtol=1e-5)

    # Packed path with multiple grid steps and a ragged last block.
    B2 = 50_000
    x2 = jax.random.normal(k_x, (B2, num_inputs), dtype=jnp.float32)
    fwd2 = jax.jit(functools.partial(linnet_forward, block_rows=4096))
    out2 = jax.block_until_ready(fwd2(x2, weight))
    ref2 = jnp.squeeze(x2 @ weight.T, axis=-1)
    assert out2.shape == (B2,), out2.shape
    assert jnp.allclose(out2, ref2, atol=1e-4, rtol=1e-4)

    # Fallback (B not a multiple of 128//D) path, also ragged.
    B3 = 301
    x3 = jax.random.normal(k_x, (B3, num_inputs), dtype=jnp.float32)
    fwd3 = jax.jit(functools.partial(linnet_forward, block_rows=128))
    out3 = jax.block_until_ready(fwd3(x3, weight))
    ref3 = jnp.squeeze(x3 @ weight.T, axis=-1)
    assert out3.shape == (B3,), out3.shape
    assert jnp.allclose(out3, ref3, atol=1e-5, rtol=1e-5)

    # return_feats path (nn.Identity).
    feats = linnet_forward(x, weight, return_feats=True)
    assert feats.shape == x.shape

    print("KERNEL_OK")
</pallas_src>

<mosaic_0001>
module attributes {stable_mosaic.version = 11 : i64} {
  func.func @_packed_kernel(%arg0: i32, %arg1: memref<2x128xf32, #tpu.memory_space<vmem>>, %arg2: memref<1x128xf32, #tpu.memory_space<vmem>>, %arg3: memref<2x4xf32, #tpu.memory_space<vmem>>) attributes {dimension_semantics = [#tpu.dimension_semantics<parallel>], iteration_bounds = array<i64: 1>, scalar_prefetch = 0 : i64, scratch_operands = 0 : i64, tpu.core_type = #tpu.core_type<tc>, window_params = [{transform_indices = @transform_0, window_bounds = array<i64: 2, 128>}, {pipeline_mode = #tpu.pipeline_mode<synchronous>, transform_indices = @transform_1, window_bounds = array<i64: 1, 128>}, {transform_indices = @transform_2, window_bounds = array<i64: 2, 4>}]} {
    %c0 = arith.constant 0 : index
    %c0_0 = arith.constant 0 : index
    %0 = vector.load %arg1[%c0, %c0_0] : memref<2x128xf32, #tpu.memory_space<vmem>>, vector<2x128xf32>
    %c0_1 = arith.constant 0 : index
    %c0_2 = arith.constant 0 : index
    %1 = vector.load %arg2[%c0_1, %c0_2] : memref<1x128xf32, #tpu.memory_space<vmem>>, vector<1x128xf32>
    %2 = vector.broadcast %1 : vector<1x128xf32> to vector<2x128xf32>
    %3 = arith.mulf %0, %2 : vector<2x128xf32>
    %4 = vector.extract_strided_slice %3 {offsets = [0, 0], sizes = [2, 32], strides = [1, 1]} : vector<2x128xf32> to vector<2x32xf32>
    %cst = arith.constant dense<0.000000e+00> : vector<2xf32>
    %5 = vector.multi_reduction <add>, %4, %cst [1] : vector<2x32xf32> to vector<2xf32>
    %6 = vector.shape_cast %5 : vector<2xf32> to vector<2x1xf32>
    %7 = vector.extract_strided_slice %3 {offsets = [0, 32], sizes = [2, 32], strides = [1, 1]} : vector<2x128xf32> to vector<2x32xf32>
    %cst_3 = arith.constant dense<0.000000e+00> : vector<2xf32>
    %8 = vector.multi_reduction <add>, %7, %cst_3 [1] : vector<2x32xf32> to vector<2xf32>
    %9 = vector.shape_cast %8 : vector<2xf32> to vector<2x1xf32>
    %10 = vector.extract_strided_slice %3 {offsets = [0, 64], sizes = [2, 32], strides = [1, 1]} : vector<2x128xf32> to vector<2x32xf32>
    %cst_4 = arith.constant dense<0.000000e+00> : vector<2xf32>
    %11 = vector.multi_reduction <add>, %10, %cst_4 [1] : vector<2x32xf32> to vector<2xf32>
    %12 = vector.shape_cast %11 : vector<2xf32> to vector<2x1xf32>
    %13 = vector.extract_strided_slice %3 {offsets = [0, 96], sizes = [2, 32], strides = [1, 1]} : vector<2x128xf32> to vector<2x32xf32>
    %cst_5 = arith.constant dense<0.000000e+00> : vector<2xf32>
    %14 = vector.multi_reduction <add>, %13, %cst_5 [1] : vector<2x32xf32> to vector<2xf32>
    %15 = vector.shape_cast %14 : vector<2xf32> to vector<2x1xf32>
    %16 = tpu.concatenate %6, %9, %12, %15 in 1 : vector<2x1xf32>, vector<2x1xf32>, vector<2x1xf32>, vector<2x1xf32> -> vector<2x4xf32>
    %c0_6 = arith.constant 0 : index
    %c0_7 = arith.constant 0 : index
    %17 = vector.load %arg3[%c0_6, %c0_7] : memref<2x4xf32, #tpu.memory_space<vmem>>, vector<2x4xf32>
    tpu.vector_store %arg3[%c0_6, %c0_7], %16 {strides = array<i32>} : memref<2x4xf32, #tpu.memory_space<vmem>>, vector<2x4xf32>,
    return
  }
  func.func @transform_0(%arg0: i32) -> (i32, i32) {
    %c0_i32 = arith.constant 0 : i32
    %c0_i32_0 = arith.constant 0 : i32
    return %arg0, %c0_i32 : i32, i32
  }
  func.func @transform_1(%arg0: i32) -> (i32, i32) {
    %c0_i32 = arith.constant 0 : i32
    %c0_i32_0 = arith.constant 0 : i32
    %c0_i32_1 = arith.constant 0 : i32
    return %c0_i32, %c0_i32_0 : i32, i32
  }
  func.func @transform_2(%arg0: i32) -> (i32, i32) {
    %c0_i32 = arith.constant 0 : i32
    %c0_i32_0 = arith.constant 0 : i32
    return %arg0, %c0_i32 : i32, i32
  }
}

</mosaic_0001>

<bundles_post_ra>
// kernel: linnet_forward.1
= control target key start
LH: loop header
LB: loop body
LE: loop exit
PB: predicated region body
PF: predicated region fallthrough
CT: control target
= control target key end

     0   :  { %s59_s13 = smov 96   ;;  %s60_s14 = smov 32   ;;  %vm20_vm0 = vcmask 254976   ;;  %vm43_vm1 = vcmask 7168   ;;  %vm45_vm2 = vcmask 15360   ;;  %vm47_vm3 = vcmask 23552   ;;  %s86_s0 = inlined_call_operand.vmem [shape: f32[2,128], index: 0, kind: input, shape index: {}]   ;;  %s87_s1 = inlined_call_operand.vmem [shape: f32[1,128], index: 1, kind: input, shape index: {}]   ;;  %s88_s2 = inlined_call_operand.vmem [shape: f32[2,4], index: 2, kind: output, shape index: {}]  }
   0x1   :  { %v11_v0 = vld [vmem:[%s86_s0] sm:$0x3]  ;;  %s61_s15 = smov 64   ;;  %vm49_vm4 = vcmask 25600  }
   0x2   :  { %v55_v1 = vld [vmem:[%s87_s1] ss:$0 sm:$0xff] }
   0x3   :  { %v19_v2 = vmul.f32 %v55_v1, %v11_v0 }
   0x5   :  { %25 = vrot.lane.b32.xlu0 %v19_v2, %s59_s13  ;;  %37 = vrot.lane.b32.xlu1 %v19_v2, %s60_s14  ;;  %v21_v3 = vsel %vm20_vm0, %v19_v2, 0.0 }
   0x9   :  { %31 = vrot.lane.b32.xlu0 %v19_v2, %s61_s15 }
  0x29   :  { %22 = vadd.xlane.f32.xlu1 %v21_v3 }
  0x77   :  { %v26_v4 = vpop.permute.xlu0 %25  ;;  %v38_v5 = vpop.permute.xlu1 %37 }
  0x78   :  { %v28_v6 = vsel %vm20_vm0, %v26_v4, 0.0  ;;  %v40_v7 = vsel %vm20_vm0, %v38_v5, 0.0 }
  0x79   :  { %29 = vadd.xlane.f32.xlu0 %v28_v6  ;;  %41 = vadd.xlane.f32.xlu1 %v40_v7 }
  0x7b   :  { %v32_v8 = vpop.permute.xlu0 %31 }
  0x7c   :  { %v34_v9 = vsel %vm20_vm0, %v32_v8, 0.0 }
  0x7d   :  { %35 = vadd.xlane.f32.xlu0 %v34_v9 }
  0xb2   :  { %v23_v10 = vpop.xlane.xlu1 %22 }
 0x102   :  { %v30_v11 = vpop.xlane.xlu0 %29  ;;  %v42_v12 = vpop.xlane.xlu1 %41 }
 0x103   :  { %v44_v13 = vsel %vm43_vm1, %v23_v10, %v30_v11 }
 0x106   :  { %v36_v14 = vpop.xlane.xlu0 %35 }
 0x107   :  { %v46_v15 = vsel %vm45_vm2, %v44_v13, %v36_v14 }
 0x108   :  { %v48_v16 = vsel %vm47_vm3, %v46_v15, %v42_v12 }
 0x109   :  { %50 = vst.msk [vmem:[%s88_s2] sm:$0x3] %vm49_vm4, %v48_v16 }

</bundles_post_ra>
